<compile_context>
chip_gen: v7x
topology: tpu7x:2x2x1
jax: 0.10.0
libtpu: 0.0.40
codegen_flags: <defaults>
</compile_context>

<pallas_src>
import jax
import jax.numpy as jnp
from jax.experimental import pallas as pl
from jax.experimental.pallas import tpu as pltpu


def _round_up(x: int, m: int) -> int:
    return (x + m - 1) // m * m


def _cls_head_kernel(x_ref, w1_ref, b1_ref, w2_ref, b2_ref, o_ref):
    # linear1 on the MXU, f32 accumulation. Operands stay in native dtype so a
    # bf16 model takes the bf16 MXU path (no VALU up-cast, half the bytes).
    h = jnp.dot(x_ref[...], w1_ref[...], preferred_element_type=jnp.float32)
    h = h + b1_ref[...].astype(jnp.float32)

    # Exact GELU (matches torch.nn.GELU() default: 0.5*x*(1+erf(x/sqrt(2)))).
    inv_sqrt2 = jnp.float32(0.7071067811865476)
    h = 0.5 * h * (1.0 + jax.lax.erf(h * inv_sqrt2))

    # linear2 on the MXU. Cast the activation to the weight dtype so the
    # second matmul also takes the narrow MXU path when weights are bf16.
    h = h.astype(w2_ref.dtype)
    out = jnp.dot(h, w2_ref[...], preferred_element_type=jnp.float32)
    out = out + b2_ref[...].astype(jnp.float32)
    o_ref[...] = out.astype(o_ref.dtype)


def classification_head(x, w1t, b1, w2t, b2, *, batch_tile: int = 256):
    """ViT MLP classification head.

    Args:
      x:   (B, d_model) [CLS] embeddings.
      w1t: (d_model, n_hidden)  -- linear1 weight, already transposed.
      b1:  (n_hidden,)
      w2t: (n_hidden, n_classes) -- linear2 weight, already transposed.
      b2:  (n_classes,)
    Returns:
      (B, n_classes) logits, dtype of x.
    """
    B, d_model = x.shape
    dm_w, n_hidden = w1t.shape
    nh_w, n_classes = w2t.shape
    assert dm_w == d_model and nh_w == n_hidden

    # Lane-dense padding: last dims to multiples of 128, batch to the tile.
    Dp = _round_up(d_model, 128)
    Hp = _round_up(n_hidden, 128)
    Cp = _round_up(n_classes, 128)
    TB = batch_tile if B >= batch_tile else _round_up(B, 8)
    Bp = _round_up(B, TB)

    x_p = jnp.pad(x, ((0, Bp - B), (0, Dp - d_model)))
    w1_p = jnp.pad(w1t, ((0, Dp - d_model), (0, Hp - n_hidden)))
    b1_p = jnp.pad(b1, (0, Hp - n_hidden)).reshape(1, Hp)
    w2_p = jnp.pad(w2t, ((0, Hp - n_hidden), (0, Cp - n_classes)))
    b2_p = jnp.pad(b2, (0, Cp - n_classes)).reshape(1, Cp)

    x_bytes = jnp.dtype(x.dtype).itemsize
    w_bytes = jnp.dtype(w1t.dtype).itemsize

    # VMEM budget: double-buffered input/output blocks + f32 intermediates,
    # plus a small margin. Capped at 64 MiB so v7x (64 MiB physical) is
    # enforced at compile time rather than discovered at runtime.
    vmem_bytes = 2 * (TB * Dp * x_bytes            # x tile
                      + Dp * Hp * w_bytes + Hp * w_bytes   # w1, b1 (resident)
                      + Hp * Cp * w_bytes + Cp * w_bytes   # w2, b2 (resident)
                      + TB * Cp * x_bytes)         # out tile
    vmem_bytes += 2 * TB * Hp * 4 + TB * Cp * 4    # f32 activation / logits
    vmem_bytes = int(min(vmem_bytes + (4 << 20), 64 << 20))

    cost = pl.CostEstimate(
        flops=2 * B * (d_model * n_hidden + n_hidden * n_classes),
        transcendentals=B * n_hidden,
        bytes_accessed=int((x.size + w1t.size + b1.size + w2t.size + b2.size)
                           * x_bytes + B * n_classes * x_bytes),
    )

    out_p = pl.pallas_call(
        _cls_head_kernel,
        out_shape=jax.ShapeDtypeStruct((Bp, Cp), x.dtype),
        grid=(Bp // TB,),
        in_specs=[
            pl.BlockSpec((TB, Dp), lambda i: (i, 0)),   # x: tiled over batch
            pl.BlockSpec((Dp, Hp), lambda i: (0, 0)),   # w1: VMEM-resident
            pl.BlockSpec((1, Hp), lambda i: (0, 0)),    # b1: VMEM-resident
            pl.BlockSpec((Hp, Cp), lambda i: (0, 0)),   # w2: VMEM-resident
            pl.BlockSpec((1, Cp), lambda i: (0, 0)),    # b2: VMEM-resident
        ],
        out_specs=pl.BlockSpec((TB, Cp), lambda i: (i, 0)),
        compiler_params=pltpu.CompilerParams(
            dimension_semantics=("parallel",),
            vmem_limit_bytes=vmem_bytes,
        ),
        cost_estimate=cost,
    )(x_p, w1_p, b1_p, w2_p, b2_p)

    return out_p[:B, :n_classes]


if __name__ == "__main__":
    # Small, module-consistent shapes: [CLS] embedding of a tiny ViT.
    B, d_model, n_hidden, n_classes = 2, 32, 64, 8

    key = jax.random.PRNGKey(0)
    kx, kw1, kb1, kw2, kb2 = jax.random.split(key, 5)

    x = jax.random.normal(kx, (B, d_model), dtype=jnp.float32)
    # Parameters in nn.Linear layout: (out_features, in_features) + (out,).
    w1 = jax.random.normal(kw1, (n_hidden, d_model), dtype=jnp.float32) * 0.05
    b1 = jax.random.normal(kb1, (n_hidden,), dtype=jnp.float32) * 0.05
    w2 = jax.random.normal(kw2, (n_classes, n_hidden), dtype=jnp.float32) * 0.05
    b2 = jax.random.normal(kb2, (n_classes,), dtype=jnp.float32) * 0.05

    # One-time parameter prep (hoisted out of the per-call hot path).
    w1t = jnp.transpose(w1)   # (d_model, n_hidden)
    w2t = jnp.transpose(w2)   # (n_hidden, n_classes)

    out = classification_head(x, w1t, b1, w2t, b2)
    out = jax.block_until_ready(out)

    # Pure-JAX reference check (exact GELU).
    h_ref = jax.nn.gelu(x @ w1.T + b1, approximate=False)
    ref = h_ref @ w2.T + b2
    assert out.shape == (B, n_classes)
    assert jnp.allclose(out, ref, atol=1e-5, rtol=1e-5)

    print("KERNEL_OK")
</pallas_src>

<mosaic_0001>
module attributes {stable_mosaic.version = 11 : i64} {
  func.func @_cls_head_kernel(%arg0: i32, %arg1: memref<8x128xf32, #tpu.memory_space<vmem>>, %arg2: memref<128x128xf32, #tpu.memory_space<vmem>>, %arg3: memref<1x128xf32, #tpu.memory_space<vmem>>, %arg4: memref<128x128xf32, #tpu.memory_space<vmem>>, %arg5: memref<1x128xf32, #tpu.memory_space<vmem>>, %arg6: memref<8x128xf32, #tpu.memory_space<vmem>>) attributes {dimension_semantics = [#tpu.dimension_semantics<parallel>], iteration_bounds = array<i64: 1>, scalar_prefetch = 0 : i64, scratch_operands = 0 : i64, tpu.core_type = #tpu.core_type<tc>, window_params = [{transform_indices = @transform_0, window_bounds = array<i64: 8, 128>}, {pipeline_mode = #tpu.pipeline_mode<synchronous>, transform_indices = @transform_1, window_bounds = array<i64: 128, 128>}, {pipeline_mode = #tpu.pipeline_mode<synchronous>, transform_indices = @transform_2, window_bounds = array<i64: 1, 128>}, {pipeline_mode = #tpu.pipeline_mode<synchronous>, transform_indices = @transform_3, window_bounds = array<i64: 128, 128>}, {pipeline_mode = #tpu.pipeline_mode<synchronous>, transform_indices = @transform_4, window_bounds = array<i64: 1, 128>}, {transform_indices = @transform_5, window_bounds = array<i64: 8, 128>}]} {
    %c0 = arith.constant 0 : index
    %c0_0 = arith.constant 0 : index
    %0 = vector.load %arg1[%c0, %c0_0] : memref<8x128xf32, #tpu.memory_space<vmem>>, vector<8x128xf32>
    %c0_1 = arith.constant 0 : index
    %c0_2 = arith.constant 0 : index
    %1 = vector.load %arg2[%c0_1, %c0_2] : memref<128x128xf32, #tpu.memory_space<vmem>>, vector<128x128xf32>
    %cst = arith.constant dense<0.000000e+00> : vector<8x128xf32>
    %2 = tpu.matmul %0, %1, %cst {dimension_numbers = #tpu.dot_dimension_numbers<[1], [0], [0], [1], [0, 0, 1, 1], [], []>} : vector<8x128xf32>, vector<128x128xf32>, vector<8x128xf32> -> vector<8x128xf32>
    %c0_3 = arith.constant 0 : index
    %c0_4 = arith.constant 0 : index
    %3 = vector.load %arg3[%c0_3, %c0_4] : memref<1x128xf32, #tpu.memory_space<vmem>>, vector<1x128xf32>
    %4 = vector.broadcast %3 : vector<1x128xf32> to vector<8x128xf32>
    %5 = arith.addf %2, %4 : vector<8x128xf32>
    %cst_5 = arith.constant 5.000000e-01 : f32
    %6 = vector.broadcast %cst_5 : f32 to vector<8x128xf32>
    %7 = arith.mulf %6, %5 : vector<8x128xf32>
    %cst_6 = arith.constant 0.707106769 : f32
    %8 = vector.broadcast %cst_6 : f32 to vector<8x128xf32>
    %9 = arith.mulf %5, %8 : vector<8x128xf32>
    %10 = math.erf %9 : vector<8x128xf32>
    %cst_7 = arith.constant 1.000000e+00 : f32
    %11 = vector.broadcast %cst_7 : f32 to vector<8x128xf32>
    %12 = arith.addf %11, %10 : vector<8x128xf32>
    %13 = arith.mulf %7, %12 : vector<8x128xf32>
    %c0_8 = arith.constant 0 : index
    %c0_9 = arith.constant 0 : index
    %14 = vector.load %arg4[%c0_8, %c0_9] : memref<128x128xf32, #tpu.memory_space<vmem>>, vector<128x128xf32>
    %cst_10 = arith.constant dense<0.000000e+00> : vector<8x128xf32>
    %15 = tpu.matmul %13, %14, %cst_10 {dimension_numbers = #tpu.dot_dimension_numbers<[1], [0], [0], [1], [0, 0, 1, 1], [], []>} : vector<8x128xf32>, vector<128x128xf32>, vector<8x128xf32> -> vector<8x128xf32>
    %c0_11 = arith.constant 0 : index
    %c0_12 = arith.constant 0 : index
    %16 = vector.load %arg5[%c0_11, %c0_12] : memref<1x128xf32, #tpu.memory_space<vmem>>, vector<1x128xf32>
    %17 = vector.broadcast %16 : vector<1x128xf32> to vector<8x128xf32>
    %18 = arith.addf %15, %17 : vector<8x128xf32>
    %c0_13 = arith.constant 0 : index
    %c0_14 = arith.constant 0 : index
    %19 = vector.load %arg6[%c0_13, %c0_14] : memref<8x128xf32, #tpu.memory_space<vmem>>, vector<8x128xf32>
    tpu.vector_store %arg6[%c0_13, %c0_14], %18 {strides = array<i32>} : memref<8x128xf32, #tpu.memory_space<vmem>>, vector<8x128xf32>,
    return
  }
  func.func @transform_0(%arg0: i32) -> (i32, i32) {
    %c0_i32 = arith.constant 0 : i32
    %c0_i32_0 = arith.constant 0 : i32
    return %arg0, %c0_i32 : i32, i32
  }
  func.func @transform_1(%arg0: i32) -> (i32, i32) {
    %c0_i32 = arith.constant 0 : i32
    %c0_i32_0 = arith.constant 0 : i32
    %c0_i32_1 = arith.constant 0 : i32
    return %c0_i32, %c0_i32_0 : i32, i32
  }
  func.func @transform_2(%arg0: i32) -> (i32, i32) {
    %c0_i32 = arith.constant 0 : i32
    %c0_i32_0 = arith.constant 0 : i32
    %c0_i32_1 = arith.constant 0 : i32
    return %c0_i32, %c0_i32_0 : i32, i32
  }
  func.func @transform_3(%arg0: i32) -> (i32, i32) {
    %c0_i32 = arith.constant 0 : i32
    %c0_i32_0 = arith.constant 0 : i32
    %c0_i32_1 = arith.constant 0 : i32
    return %c0_i32, %c0_i32_0 : i32, i32
  }
  func.func @transform_4(%arg0: i32) -> (i32, i32) {
    %c0_i32 = arith.constant 0 : i32
    %c0_i32_0 = arith.constant 0 : i32
    %c0_i32_1 = arith.constant 0 : i32
    return %c0_i32, %c0_i32_0 : i32, i32
  }
  func.func @transform_5(%arg0: i32) -> (i32, i32) {
    %c0_i32 = arith.constant 0 : i32
    %c0_i32_0 = arith.constant 0 : i32
    return %arg0, %c0_i32 : i32, i32
  }
}

</mosaic_0001>

<bundles_post_ra>
// kernel: tpu_custom_call.1
= control target key start
LH: loop header
LB: loop body
LE: loop exit
PB: predicated region body
PF: predicated region fallthrough
CT: control target
= control target key end

     0   :  { %10 = vsyncpa [#allocation3], 0  ;;  %s643_s0 = inlined_call_operand.hbm [shape: f32[8,128], index: 0, kind: input, shape index: {}]   ;;  %s644_s1 = inlined_call_operand.hbm [shape: f32[128,128], index: 1, kind: input, shape index: {}]   ;;  %s645_s2 = inlined_call_operand.vmem [shape: f32[1,128], index: 2, kind: input, shape index: {}]   ;;  %s646_s3 = inlined_call_operand.hbm [shape: f32[128,128], index: 3, kind: input, shape index: {}]   ;;  %s647_s4 = inlined_call_operand.vmem [shape: f32[1,128], index: 4, kind: input, shape index: {}]   ;;  %s648_s5 = inlined_call_operand.hbm [shape: f32[8,128], index: 5, kind: output, shape index: {}]  }
   0x1   :  { %11 = vsyncpa [#allocation6], 0 }
   0x2   :  { %12 = vsyncpa [#allocation4], 0  ;;  %s528_s18 = smov [#allocation5]   ;;  %s434_s22 = scalar_lea.hbm %s644_s1, 2048 }
   0x3   :  { %s28_s19 = sshll.u32 %s528_s18, 4  ;;  %p435_p0 = scmp.ne.s32.totalorder %s644_s1, %s434_s22  ;;  %s29_s19 = int_to_ptr.vmem [resolvable:$true] %s28_s19 }
   0x4   :  { %p438_p1 = scmp.lt.u32.totalorder %s434_s22, %s644_s1 }
   0x6   :  { %p440_p2 = pnand %p438_p1, %p435_p0 }
   0x8   :  { %443 = shalt.err (!%p440_p2)
}
   0x9   :  { %s444_s27 = scalar_lea.vmem %s29_s19, 2048  ;;  %p449_p4 = scmp.lt.s32.totalorder %s29_s19, %s29_s19 }
   0xa   :  { %p445_p3 = scmp.ne.s32.totalorder %s29_s19, %s444_s27  ;;  %p450_p5 = scmp.lt.s32.totalorder %s444_s27, %s444_s27 }
   0xc   :  { %p451_p6 = por %p450_p5, %p449_p4 }
   0xe   :  { %p452_p7 = pnand %p451_p6, %p445_p3 }
  0x10   :  { %455 = shalt.err (!%p452_p7)
}
  0x11   :  { %s529_s28 = smov 128   ;;  %s530_s29 = smov 8  }
  0x12   :  { %34 = dma.hbm_to_vmem [thread:$0]  %s644_s1, 2048, %s29_s19, [#allocation6], %s529_s28, %s529_s28, %s530_s29  }
  0x13   :  { %s531_s7 = smov [#allocation2]   ;;  %s532_s9 = smov [#allocation7]  }
  0x14   :  { %s19_s8 = sshll.u32 %s531_s7, 4  ;;  %s42_s10 = sshll.u32 %s532_s9, 4  ;;  %s20_s8 = int_to_ptr.vmem [resolvable:$true] %s19_s8  ;;  %s43_s10 = int_to_ptr.vmem [resolvable:$true] %s42_s10 }
  0x15   :  { %s456_s13 = scalar_lea.hbm %s643_s0, 128 }
  0x16   :  { %p457_p8 = scmp.ne.s32.totalorder %s643_s0, %s456_s13  ;;  %p460_p9 = scmp.lt.u32.totalorder %s456_s13, %s643_s0 }
  0x18   :  { %p462_p10 = pnand %p460_p9, %p457_p8 }
  0x1a   :  { %465 = shalt.err (!%p462_p10)
}
  0x1b   :  { %s466_s1 = scalar_lea.vmem %s20_s8, 128  ;;  %p471_p12 = scmp.lt.s32.totalorder %s20_s8, %s20_s8 }
  0x1c   :  { %p467_p11 = scmp.ne.s32.totalorder %s20_s8, %s466_s1  ;;  %p472_p13 = scmp.lt.s32.totalorder %s466_s1, %s466_s1 }
  0x1e   :  { %p473_p0 = por %p472_p13, %p471_p12 }
  0x20   :  { %p474_p1 = pnand %p473_p0, %p467_p11 }
  0x22   :  { %477 = shalt.err (!%p474_p1)
}
  0x23   :  { %22 = dma.hbm_to_vmem [thread:$0]  %s643_s0, 128, %s20_s8, [#allocation3]  }
  0x24   :  { %s478_s22 = scalar_lea.hbm %s646_s3, 2048 }
  0x25   :  { %p479_p2 = scmp.ne.s32.totalorder %s646_s3, %s478_s22  ;;  %p482_p3 = scmp.lt.u32.totalorder %s478_s22, %s646_s3 }
  0x27   :  { %p484_p4 = pnand %p482_p3, %p479_p2 }
  0x29   :  { %487 = shalt.err (!%p484_p4)
}
  0x2a   :  { %s488_s27 = scalar_lea.vmem %s43_s10, 2048  ;;  %p493_p6 = scmp.lt.s32.totalorder %s43_s10, %s43_s10 }
  0x2b   :  { %p489_p5 = scmp.ne.s32.totalorder %s43_s10, %s488_s27  ;;  %p494_p7 = scmp.lt.s32.totalorder %s488_s27, %s488_s27 }
  0x2d   :  { %p495_p8 = por %p494_p7, %p493_p6 }
  0x2f   :  { %p496_p9 = pnand %p495_p8, %p489_p5 }
  0x31   :  { %499 = shalt.err (!%p496_p9)
}
  0x32   :  { %48 = dma.hbm_to_vmem [thread:$0]  %s646_s3, 2048, %s43_s10, [#allocation6], %s529_s28, %s529_s28, %s530_s29  }
  0x33   :  { %522 = dma.done.wait [#allocation3], 128  }
  0x34   :  { %523 = vsyncadd [#allocation3], 4294967168 }
  0x35   :  { %524 = dma.done.wait [#allocation6], 4096  }
  0x36   :  { %525 = vsyncadd [#allocation6], 4294963200  ;;  %v533_v0 = vmov 0.0|0.0   ;;  %vm534_vm0 = vmmov 0   ;;  %v535_v1 = vmov 0.0   ;;  %v61_v2 = vld [vmem:[#allocation5] sm:$0xff] }
  0x37   :  { %375 = vmatprep.subr.bf16.mxu0 %v533_v0  ;;  %337 = vmatprep.mubr.msk.f32.mxu0 %vm534_vm0, %v535_v1  ;;  %v62_v3 = vld [vmem:[#allocation5 + $0x8] sm:$0xff]  ;;  %v63_v4 = vld [vmem:[#allocation5 + $0x10] sm:$0xff]  ;;  %v64_v6 = vld [vmem:[#allocation5 + $0x18] sm:$0xff]  ;;  %s536_s7 = smov [#allocation8]  }
  0x38   :  { %399 = vmatprep.subr.bf16.mxu1 %v533_v0  ;;  %372 = vmatprep.mubr.msk.f32.mxu1 %vm534_vm0, %v535_v1  ;;  %v376_v5 = vpack.c.bf16 %v62_v3, %v61_v2  ;;  %v379_v7 = vpack.c.bf16 %v64_v6, %v63_v4  ;;  %v65_v8 = vld [vmem:[#allocation5 + $0x20] sm:$0xff]  ;;  %v66_v9 = vld [vmem:[#allocation5 + $0x28] sm:$0xff]  ;;  %v161_v12 = vld [vmem:[#allocation7 + $0x10] sm:$0xff]  ;;  %s259_s8 = sshll.u32 %s536_s7, 4  ;;  %s260_s8 = int_to_ptr.vmem [resolvable:$true] %s259_s8 }
  0x39   :  { %v159_v10 = vld [vmem:[#allocation7] sm:$0xff]  ;;  %v160_v11 = vld [vmem:[#allocation7 + $0x8] sm:$0xff]  ;;  %v162_v13 = vld [vmem:[#allocation7 + $0x18] sm:$0xff]  ;;  %v382_v14 = vpack.c.bf16 %v66_v9, %v65_v8  ;;  %p505_p11 = scmp.lt.s32.totalorder %s260_s8, %s260_s8 }
  0x3a   :  { %377 = vmatpush3.bf16.msra.mxu0 %v376_v5  ;;  %v400_v15 = vpack.c.bf16 %v160_v11, %v159_v10  ;;  %v67_v16 = vld [vmem:[#allocation5 + $0x30] sm:$0xff]  ;;  %v68_v17 = vld [vmem:[#allocation5 + $0x38] sm:$0xff]  ;;  %v403_v18 = vpack.c.bf16 %v162_v13, %v161_v12  ;;  %v163_v19 = vld [vmem:[#allocation7 + $0x20] sm:$0xff] }
  0x3b   :  { %378 = vmatprep.subr.bf16.mxu0 %v533_v0  ;;  %v164_v20 = vld [vmem:[#allocation7 + $0x28] sm:$0xff]  ;;  %v385_v21 = vpack.c.bf16 %v68_v17, %v67_v16  ;;  %v69_v22 = vld [vmem:[#allocation5 + $0x40] sm:$0xff]  ;;  %v71_v26 = vld [vmem:[#allocation5 + $0x50] sm:$0xff] }
  0x3c   :  { %401 = vmatpush3.bf16.msra.mxu1 %v400_v15  ;;  %v70_v23 = vld [vmem:[#allocation5 + $0x48] sm:$0xff]  ;;  %v406_v24 = vpack.c.bf16 %v164_v20, %v163_v19  ;;  %v72_v27 = vld [vmem:[#allocation5 + $0x58] sm:$0xff]  ;;  %v73_v29 = vld [vmem:[#allocation5 + $0x60] sm:$0xff] }
  0x3d   :  { %402 = vmatprep.subr.bf16.mxu1 %v533_v0  ;;  %v388_v25 = vpack.c.bf16 %v70_v23, %v69_v22  ;;  %v391_v28 = vpack.c.bf16 %v72_v27, %v71_v26  ;;  %v74_v30 = vld [vmem:[#allocation5 + $0x68] sm:$0xff]  ;;  %v75_v32 = vld [vmem:[#allocation5 + $0x70] sm:$0xff]  ;;  %v76_v33 = vld [vmem:[#allocation5 + $0x78] sm:$0xff] }
  0x3e   :  { %380 = vmatpush3.bf16.msra.mxu0 %v379_v7  ;;  %v394_v31 = vpack.c.bf16 %v74_v30, %v73_v29  ;;  %v397_v34 = vpack.c.bf16 %v76_v33, %v75_v32  ;;  %v60_v35 = vld [vmem:[#allocation2] sm:$0xff]  ;;  %v165_v36 = vld [vmem:[#allocation7 + $0x30] sm:$0xff]  ;;  %v167_v39 = vld [vmem:[#allocation7 + $0x40] sm:$0xff] }
  0x3f   :  { %381 = vmatprep.subr.bf16.mxu0 %v533_v0  ;;  %v166_v37 = vld [vmem:[#allocation7 + $0x38] sm:$0xff]  ;;  %v168_v40 = vld [vmem:[#allocation7 + $0x48] sm:$0xff]  ;;  %v169_v42 = vld [vmem:[#allocation7 + $0x50] sm:$0xff] }
  0x40   :  { %404 = vmatpush3.bf16.msra.mxu1 %v403_v18  ;;  %v409_v38 = vpack.c.bf16 %v166_v37, %v165_v36  ;;  %v412_v41 = vpack.c.bf16 %v168_v40, %v167_v39  ;;  %v170_v43 = vld [vmem:[#allocation7 + $0x58] sm:$0xff]  ;;  %v171_v45 = vld [vmem:[#allocation7 + $0x60] sm:$0xff]  ;;  %v172_v46 = vld [vmem:[#allocation7 + $0x68] sm:$0xff] }
  0x41   :  { %405 = vmatprep.subr.bf16.mxu1 %v533_v0  ;;  %v415_v44 = vpack.c.bf16 %v170_v43, %v169_v42  ;;  %v418_v47 = vpack.c.bf16 %v172_v46, %v171_v45  ;;  %v173_v48 = vld [vmem:[#allocation7 + $0x70] sm:$0xff]  ;;  %v174_v49 = vld [vmem:[#allocation7 + $0x78] sm:$0xff] }
  0x42   :  { %383 = vmatpush3.bf16.msra.mxu0 %v382_v14  ;;  %v421_v50 = vpack.c.bf16 %v174_v49, %v173_v48  ;;  %v269_v51 = vld [vmem:[%s645_s2] ss:$0 sm:$0xff]  ;;  %s500_s2 = scalar_lea.vmem %s260_s8, 128 }
  0x43   :  { %384 = vmatprep.subr.bf16.mxu0 %v533_v0  ;;  %v270_v60 = vld [vmem:[%s647_s4] ss:$0 sm:$0xff]  ;;  %p501_p10 = scmp.ne.s32.totalorder %s260_s8, %s500_s2  ;;  %p506_p12 = scmp.lt.s32.totalorder %s500_s2, %s500_s2 }
  0x44   :  { %407 = vmatpush3.bf16.msra.mxu1 %v406_v24 }
  0x45   :  { %408 = vmatprep.subr.bf16.mxu1 %v533_v0  ;;  %p507_p13 = por %p506_p12, %p505_p11 }
  0x46   :  { %386 = vmatpush3.bf16.msra.mxu0 %v385_v21 }
  0x47   :  { %387 = vmatprep.subr.bf16.mxu0 %v533_v0  ;;  %p508_p0 = pnand %p507_p13, %p501_p10 }
  0x48   :  { %410 = vmatpush3.bf16.msra.mxu1 %v409_v38 }
  0x49   :  { %411 = vmatprep.subr.bf16.mxu1 %v533_v0 }
  0x4a   :  { %389 = vmatpush3.bf16.msra.mxu0 %v388_v25 }
  0x4b   :  { %390 = vmatprep.subr.bf16.mxu0 %v533_v0 }
  0x4c   :  { %413 = vmatpush3.bf16.msra.mxu1 %v412_v41 }
  0x4d   :  { %414 = vmatprep.subr.bf16.mxu1 %v533_v0 }
  0x4e   :  { %392 = vmatpush3.bf16.msra.mxu0 %v391_v28 }
  0x4f   :  { %393 = vmatprep.subr.bf16.mxu0 %v533_v0 }
  0x50   :  { %416 = vmatpush3.bf16.msra.mxu1 %v415_v44 }
  0x51   :  { %417 = vmatprep.subr.bf16.mxu1 %v533_v0 }
  0x52   :  { %395 = vmatpush3.bf16.msra.mxu0 %v394_v31 }
  0x53   :  { %396 = vmatprep.subr.bf16.mxu0 %v533_v0 }
  0x54   :  { %419 = vmatpush3.bf16.msra.mxu1 %v418_v47 }
  0x55   :  { %420 = vmatprep.subr.bf16.mxu1 %v533_v0 }
  0x56   :  { %398 = vmatpush3.bf16.msra.mxu0 %v397_v34 }
  0x58   :  { %422 = vmatpush3.bf16.msra.mxu1 %v421_v50 }
  0x59   :  { %338 = vmatmul.mubr.f32.vlgmr.msra.gmra.mrb[0].mxu0 %v60_v35 }
 0x12c   :  { %v150_v52 = vpop.f32.mrb[0].mxu0 }
 0x12d   :  { %v151_v53 = vadd.f32 %v269_v51, %v150_v52  ;;  %v339_v54 = vpop.f32.mrb[1].mxu0 }
 0x12f   :  { %v155_v55 = vmul.f32 0.70710677, %v151_v53  ;;  %v154_v57 = vmul.f32 0.5, %v151_v53 }
 0x131   :  { %432 = verf.f32 %v155_v55 }
 0x13b   :  { %v433_v56 = vpop.eup %432 }
 0x13c   :  { %v157_v58 = vadd.f32 1.0, %v433_v56 }
 0x13e   :  { %v158_v59 = vmul.f32 %v157_v58, %v154_v57 }
 0x140   :  { %373 = vmatmul.mubr.f32.vlgmr.msra.gmra.mrb[0].mxu1 %v158_v59 }
 0x213   :  { %v248_v61 = vpop.f32.mrb[0].mxu1 }
 0x214   :  { %v249_v62 = vadd.f32 %v270_v60, %v248_v61  ;;  %v374_v63 = vpop.f32.mrb[1].mxu1 }
 0x216   :  { %252 = vst [vmem:[#allocation8] sm:$0xff] %v249_v62 }
 0x217   :  { %511 = shalt.err (!%p508_p0)
}
 0x218   :  { %s512_s11 = scalar_lea.hbm %s648_s5, 128 }
 0x219   :  { %p513_p1 = scmp.ne.s32.totalorder %s648_s5, %s512_s11  ;;  %p516_p2 = scmp.lt.u32.totalorder %s512_s11, %s648_s5 }
 0x21b   :  { %p518_p3 = pnand %p516_p2, %p513_p1 }
 0x21d   :  { %521 = shalt.err (!%p518_p3)
}
 0x21e   :  { %262 = dma.vmem_to_hbm [thread:$0]  %s260_s8, 128, %s648_s5, [#allocation4]  }
 0x21f   :  { %526 = dma.done.wait [#allocation4], 128  }
 0x220   :  { %527 = vsyncadd [#allocation4], 4294967168 }
 0x221   :  { %266 = vsyncpa [#allocation3], 1 }
 0x222   :  { %267 = vsyncpa [#allocation6], 1 }
 0x223   :  { %268 = vsyncpa [#allocation4], 1 }

</bundles_post_ra>
